<compile_context>
chip_gen: v7x
topology: tpu7x:2x2x1
jax: 0.10.0
libtpu: 0.0.40
codegen_flags: <defaults>
</compile_context>

<pallas_src>
import jax
import jax.numpy as jnp
from jax.experimental import pallas as pl
from jax.experimental.pallas import tpu as pltpu


def _round_up(n, m):
    return ((n + m - 1) // m) * m


def _choose_fold(in_dim, hidden, out_dim):
    """Fold enough batch rows into lanes that the narrowest feature dim fills 128 lanes,
    without letting the folded (block-diagonal) weights grow past 512 lanes."""
    f = 1
    while (f * min(in_dim, hidden, out_dim) < 128
           and 2 * f * max(in_dim, hidden, out_dim) <= 512):
        f *= 2
    return f


def _block_diag(w, fold):
    """(in, out) -> (fold*in, fold*out) with `fold` copies of w on the diagonal."""
    if fold == 1:
        return w
    kin, kout = w.shape
    out = jnp.zeros((fold, kin, fold, kout), w.dtype)
    idx = jnp.arange(fold)
    out = out.at[idx, :, idx, :].set(w)
    return out.reshape(fold * kin, fold * kout)


def mlp_kernel(x_ref, w1_ref, b1_ref, w2_ref, b2_ref, w3_ref, b3_ref, o_ref):
    # Cast the streamed x tile to the matmul dtype in-kernel (VPU op; avoids a separate
    # wrapper-side HBM cast pass).
    x = x_ref[...].astype(w1_ref.dtype)
    # Layer 1: Linear + ReLU (MXU matmul, f32 accumulation, f32 epilogue).
    h = jnp.dot(x, w1_ref[...], preferred_element_type=jnp.float32)
    h = jnp.maximum(h + b1_ref[...], 0.0)
    # Layer 2: Linear + ReLU.
    h = jnp.dot(h.astype(w2_ref.dtype), w2_ref[...], preferred_element_type=jnp.float32)
    h = jnp.maximum(h + b2_ref[...], 0.0)
    # Layer 3: Linear (no activation).
    out = jnp.dot(h.astype(w3_ref.dtype), w3_ref[...], preferred_element_type=jnp.float32)
    out = out + b3_ref[...]
    o_ref[...] = out.astype(o_ref.dtype)


def azhang_mlp_pallas(x, w1, b1, w2, b2, w3, b3, *, tile_b=8192,
                      compute_dtype=jnp.bfloat16, out_dtype=None, fold=None):
    """Fused 3-layer MLP forward.

    x: (batch, in_dim) in its native dtype (cast to `compute_dtype` happens in-kernel).
    w*: (in_features, out_features) (transposed vs nn.Linear); b*: (out_features,).
    tile_b: original batch rows per grid step (default 8192 to amortize per-step overhead;
            capped so VMEM stays inside the 32 MiB scoped default, relevant on v7x).
    out_dtype: output dtype (default x.dtype; pass jnp.bfloat16 to halve writeback bytes).
    fold: lane-fold factor (default: auto; 8 for 32/32/16 feature widths).
    """
    batch, in_dim = x.shape
    hidden = w1.shape[1]
    out_dim = w3.shape[1]
    out_dtype = x.dtype if out_dtype is None else out_dtype

    if fold is None:
        fold = _choose_fold(in_dim, hidden, out_dim)

    # Round batch up to a multiple of fold*16 (sublane-friendly folded rows). Zero padding
    # keeps the block-diagonal matmul exact for valid rows (no NaN/garbage can leak across
    # lane slots); padded rows are sliced off. No-op when batch is already aligned.
    batch_pad = _round_up(batch, fold * 16)
    if batch_pad != batch:
        x = jnp.pad(x, ((0, batch_pad - batch), (0, 0)))
    rows = batch_pad // fold

    # Lane-fold x: contiguous row-major reshape (free, no HBM copy).
    xf = x.reshape(rows, fold * in_dim)

    # Block-diagonal weights (fold x a few KiB: negligible) and lane-tiled f32 biases.
    w1f = _block_diag(w1.astype(compute_dtype), fold)
    w2f = _block_diag(w2.astype(compute_dtype), fold)
    w3f = _block_diag(w3.astype(compute_dtype), fold)
    b1f = jnp.tile(b1.astype(jnp.float32), fold).reshape(1, fold * hidden)
    b2f = jnp.tile(b2.astype(jnp.float32), fold).reshape(1, fold * hidden)
    b3f = jnp.tile(b3.astype(jnp.float32), fold).reshape(1, fold * out_dim)

    # Folded-row tile: target tile_b original rows, multiple of 16, capped by the array
    # size and by a ~24 MiB VMEM budget (double-buffered x/out blocks + intermediates).
    x_bytes = jnp.dtype(x.dtype).itemsize
    o_bytes = jnp.dtype(out_dtype).itemsize
    c_bytes = jnp.dtype(compute_dtype).itemsize
    per_row_bytes = fold * (2 * in_dim * x_bytes           # x block (double-buffered)
                            + 2 * out_dim * o_bytes        # out block (double-buffered)
                            + in_dim * c_bytes             # casted x
                            + 2 * hidden * 4 + out_dim * 4)  # f32 intermediates
    vmem_cap_rows = max(16, (int(24 * 1024 * 1024) // per_row_bytes) // 16 * 16)
    tile_rows = _round_up(max(tile_b // fold, 16), 16)
    tile_rows = min(tile_rows, rows, vmem_cap_rows)
    n_blocks = pl.cdiv(rows, tile_rows)

    def resident(shape):
        # Constant index map -> DMA'd once, VMEM-resident across all grid steps.
        return pl.BlockSpec(shape, lambda i: (0, 0))

    cost = pl.CostEstimate(
        flops=2 * batch * (in_dim * hidden + hidden * hidden + hidden * out_dim),
        transcendentals=0,
        bytes_accessed=int(batch * in_dim * x_bytes + batch * out_dim * o_bytes
                           + (w1f.size + w2f.size + w3f.size) * c_bytes
                           + (b1f.size + b2f.size + b3f.size) * 4),
    )

    out = pl.pallas_call(
        mlp_kernel,
        out_shape=jax.ShapeDtypeStruct((rows, fold * out_dim), out_dtype),
        grid=(n_blocks,),
        in_specs=[
            pl.BlockSpec((tile_rows, fold * in_dim), lambda i: (i, 0)),  # x: streamed
            resident((fold * in_dim, fold * hidden)),                    # W1 (block-diag)
            resident((1, fold * hidden)),                                # b1
            resident((fold * hidden, fold * hidden)),                    # W2 (block-diag)
            resident((1, fold * hidden)),                                # b2
            resident((fold * hidden, fold * out_dim)),                   # W3 (block-diag)
            resident((1, fold * out_dim)),                               # b3
        ],
        out_specs=pl.BlockSpec((tile_rows, fold * out_dim), lambda i: (i, 0)),
        compiler_params=pltpu.CompilerParams(
            # Batch tiles are independent; lets Mosaic shard grid steps across v7x's 2 TCs
            # (switch to pltpu.CORE_PARALLEL if profiling shows a single-core run there).
            dimension_semantics=("parallel",),
        ),
        cost_estimate=cost,
    )(xf, w1f, b1f, w2f, b2f, w3f, b3f)

    # Un-fold the lane-dense output; slice only if batch was padded (no-op when aligned).
    out = out.reshape(batch_pad, out_dim)
    if batch_pad != batch:
        out = out[:batch]
    return out


def init_params(key, in_dim, out_dim, hidden_size, dtype=jnp.float32):
    """Deterministic synthetic init (PyTorch-Linear-like uniform scaling)."""
    ks = jax.random.split(key, 6)

    def lin(kw, kb, fan_in, fan_out):
        bound = 1.0 / jnp.sqrt(fan_in)
        w = jax.random.uniform(kw, (fan_in, fan_out), dtype, -bound, bound)
        b = jax.random.uniform(kb, (fan_out,), dtype, -bound, bound)
        return w, b

    w1, b1 = lin(ks[0], ks[1], in_dim, hidden_size)
    w2, b2 = lin(ks[2], ks[3], hidden_size, hidden_size)
    w3, b3 = lin(ks[4], ks[5], hidden_size, out_dim)
    return w1, b1, w2, b2, w3, b3


if __name__ == "__main__":
    # Small demo shapes consistent with the module's forward: x is (batch, in_dim).
    batch, in_dim, hidden_size, out_dim = 512, 32, 32, 16

    key = jax.random.PRNGKey(0)
    k_x, k_p = jax.random.split(key)
    x = jax.random.normal(k_x, (batch, in_dim), jnp.float32)
    params = init_params(k_p, in_dim, out_dim, hidden_size)

    # Pure-JAX reference.
    w1, b1, w2, b2, w3, b3 = params
    ref = jnp.maximum(x @ w1 + b1[None, :], 0.0)
    ref = jnp.maximum(ref @ w2 + b2[None, :], 0.0)
    ref = ref @ w3 + b3[None, :]

    # tile_b=128 -> 16 folded rows/step, 4 grid steps at these shapes, so pipelining and
    # weight residency are exercised; production use keeps the larger default tile.
    out_bf16 = jax.block_until_ready(azhang_mlp_pallas(x, *params, tile_b=128))
    out_f32 = jax.block_until_ready(
        azhang_mlp_pallas(x, *params, tile_b=128, compute_dtype=jnp.float32))

    assert out_bf16.shape == (batch, out_dim)
    assert out_f32.shape == (batch, out_dim)
    # f32-operand path: tolerance loosened slightly vs exact in case Mosaic lowers f32
    # dots at reduced MXU precision on some generations.
    assert jnp.allclose(out_f32, ref, atol=1e-3, rtol=1e-3)
    # bf16 matmul operands with f32 accumulation: ~1e-2 expected error.
    assert jnp.allclose(out_bf16, ref, atol=5e-2, rtol=5e-2)

    # Unaligned batch exercises the (small, conditional) zero-pad + slice path.
    out_odd = jax.block_until_ready(azhang_mlp_pallas(x[:300], *params, tile_b=128))
    assert out_odd.shape == (300, out_dim)
    assert jnp.allclose(out_odd, ref[:300], atol=5e-2, rtol=5e-2)

    print("KERNEL_OK")
</pallas_src>

<mosaic_0001>
module attributes {stable_mosaic.version = 11 : i64} {
  func.func @mlp_kernel(%arg0: i32, %arg1: memref<16x256xf32, #tpu.memory_space<vmem>>, %arg2: memref<256x256xbf16, #tpu.memory_space<vmem>>, %arg3: memref<1x256xf32, #tpu.memory_space<vmem>>, %arg4: memref<256x256xbf16, #tpu.memory_space<vmem>>, %arg5: memref<1x256xf32, #tpu.memory_space<vmem>>, %arg6: memref<256x128xbf16, #tpu.memory_space<vmem>>, %arg7: memref<1x128xf32, #tpu.memory_space<vmem>>, %arg8: memref<16x128xf32, #tpu.memory_space<vmem>>) attributes {dimension_semantics = [#tpu.dimension_semantics<parallel>], iteration_bounds = array<i64: 4>, scalar_prefetch = 0 : i64, scratch_operands = 0 : i64, tpu.core_type = #tpu.core_type<tc>, window_params = [{transform_indices = @transform_0, window_bounds = array<i64: 16, 256>}, {pipeline_mode = #tpu.pipeline_mode<synchronous>, transform_indices = @transform_1, window_bounds = array<i64: 256, 256>}, {pipeline_mode = #tpu.pipeline_mode<synchronous>, transform_indices = @transform_2, window_bounds = array<i64: 1, 256>}, {pipeline_mode = #tpu.pipeline_mode<synchronous>, transform_indices = @transform_3, window_bounds = array<i64: 256, 256>}, {pipeline_mode = #tpu.pipeline_mode<synchronous>, transform_indices = @transform_4, window_bounds = array<i64: 1, 256>}, {pipeline_mode = #tpu.pipeline_mode<synchronous>, transform_indices = @transform_5, window_bounds = array<i64: 256, 128>}, {pipeline_mode = #tpu.pipeline_mode<synchronous>, transform_indices = @transform_6, window_bounds = array<i64: 1, 128>}, {transform_indices = @transform_7, window_bounds = array<i64: 16, 128>}]} {
    %c0 = arith.constant 0 : index
    %c0_0 = arith.constant 0 : index
    %0 = vector.load %arg1[%c0, %c0_0] : memref<16x256xf32, #tpu.memory_space<vmem>>, vector<16x256xf32>
    %1 = arith.truncf %0 : vector<16x256xf32> to vector<16x256xbf16>
    %c0_1 = arith.constant 0 : index
    %c0_2 = arith.constant 0 : index
    %2 = vector.load %arg2[%c0_1, %c0_2] : memref<256x256xbf16, #tpu.memory_space<vmem>>, vector<256x256xbf16>
    %cst = arith.constant dense<0.000000e+00> : vector<16x256xf32>
    %3 = tpu.matmul %1, %2, %cst {dimension_numbers = #tpu.dot_dimension_numbers<[1], [0], [0], [1], [0, 0, 1, 1], [], []>} : vector<16x256xbf16>, vector<256x256xbf16>, vector<16x256xf32> -> vector<16x256xf32>
    %c0_3 = arith.constant 0 : index
    %c0_4 = arith.constant 0 : index
    %4 = vector.load %arg3[%c0_3, %c0_4] : memref<1x256xf32, #tpu.memory_space<vmem>>, vector<1x256xf32>
    %5 = vector.broadcast %4 : vector<1x256xf32> to vector<16x256xf32>
    %6 = arith.addf %3, %5 : vector<16x256xf32>
    %cst_5 = arith.constant 0.000000e+00 : f32
    %7 = vector.broadcast %cst_5 : f32 to vector<16x256xf32>
    %8 = arith.maximumf %6, %7 : vector<16x256xf32>
    %9 = arith.truncf %8 : vector<16x256xf32> to vector<16x256xbf16>
    %c0_6 = arith.constant 0 : index
    %c0_7 = arith.constant 0 : index
    %10 = vector.load %arg4[%c0_6, %c0_7] : memref<256x256xbf16, #tpu.memory_space<vmem>>, vector<256x256xbf16>
    %cst_8 = arith.constant dense<0.000000e+00> : vector<16x256xf32>
    %11 = tpu.matmul %9, %10, %cst_8 {dimension_numbers = #tpu.dot_dimension_numbers<[1], [0], [0], [1], [0, 0, 1, 1], [], []>} : vector<16x256xbf16>, vector<256x256xbf16>, vector<16x256xf32> -> vector<16x256xf32>
    %c0_9 = arith.constant 0 : index
    %c0_10 = arith.constant 0 : index
    %12 = vector.load %arg5[%c0_9, %c0_10] : memref<1x256xf32, #tpu.memory_space<vmem>>, vector<1x256xf32>
    %13 = vector.broadcast %12 : vector<1x256xf32> to vector<16x256xf32>
    %14 = arith.addf %11, %13 : vector<16x256xf32>
    %cst_11 = arith.constant 0.000000e+00 : f32
    %15 = vector.broadcast %cst_11 : f32 to vector<16x256xf32>
    %16 = arith.maximumf %14, %15 : vector<16x256xf32>
    %17 = arith.truncf %16 : vector<16x256xf32> to vector<16x256xbf16>
    %c0_12 = arith.constant 0 : index
    %c0_13 = arith.constant 0 : index
    %18 = vector.load %arg6[%c0_12, %c0_13] : memref<256x128xbf16, #tpu.memory_space<vmem>>, vector<256x128xbf16>
    %cst_14 = arith.constant dense<0.000000e+00> : vector<16x128xf32>
    %19 = tpu.matmul %17, %18, %cst_14 {dimension_numbers = #tpu.dot_dimension_numbers<[1], [0], [0], [1], [0, 0, 1, 1], [], []>} : vector<16x256xbf16>, vector<256x128xbf16>, vector<16x128xf32> -> vector<16x128xf32>
    %c0_15 = arith.constant 0 : index
    %c0_16 = arith.constant 0 : index
    %20 = vector.load %arg7[%c0_15, %c0_16] : memref<1x128xf32, #tpu.memory_space<vmem>>, vector<1x128xf32>
    %21 = vector.broadcast %20 : vector<1x128xf32> to vector<16x128xf32>
    %22 = arith.addf %19, %21 : vector<16x128xf32>
    %c0_17 = arith.constant 0 : index
    %c0_18 = arith.constant 0 : index
    %23 = vector.load %arg8[%c0_17, %c0_18] : memref<16x128xf32, #tpu.memory_space<vmem>>, vector<16x128xf32>
    tpu.vector_store %arg8[%c0_17, %c0_18], %22 {strides = array<i32>} : memref<16x128xf32, #tpu.memory_space<vmem>>, vector<16x128xf32>,
    return
  }
  func.func @transform_0(%arg0: i32) -> (i32, i32) {
    %c0_i32 = arith.constant 0 : i32
    %c0_i32_0 = arith.constant 0 : i32
    return %arg0, %c0_i32 : i32, i32
  }
  func.func @transform_1(%arg0: i32) -> (i32, i32) {
    %c0_i32 = arith.constant 0 : i32
    %c0_i32_0 = arith.constant 0 : i32
    %c0_i32_1 = arith.constant 0 : i32
    return %c0_i32, %c0_i32_0 : i32, i32
  }
  func.func @transform_2(%arg0: i32) -> (i32, i32) {
    %c0_i32 = arith.constant 0 : i32
    %c0_i32_0 = arith.constant 0 : i32
    %c0_i32_1 = arith.constant 0 : i32
    return %c0_i32, %c0_i32_0 : i32, i32
  }
  func.func @transform_3(%arg0: i32) -> (i32, i32) {
    %c0_i32 = arith.constant 0 : i32
    %c0_i32_0 = arith.constant 0 : i32
    %c0_i32_1 = arith.constant 0 : i32
    return %c0_i32, %c0_i32_0 : i32, i32
  }
  func.func @transform_4(%arg0: i32) -> (i32, i32) {
    %c0_i32 = arith.constant 0 : i32
    %c0_i32_0 = arith.constant 0 : i32
    %c0_i32_1 = arith.constant 0 : i32
    return %c0_i32, %c0_i32_0 : i32, i32
  }
  func.func @transform_5(%arg0: i32) -> (i32, i32) {
    %c0_i32 = arith.constant 0 : i32
    %c0_i32_0 = arith.constant 0 : i32
    %c0_i32_1 = arith.constant 0 : i32
    return %c0_i32, %c0_i32_0 : i32, i32
  }
  func.func @transform_6(%arg0: i32) -> (i32, i32) {
    %c0_i32 = arith.constant 0 : i32
    %c0_i32_0 = arith.constant 0 : i32
    %c0_i32_1 = arith.constant 0 : i32
    return %c0_i32, %c0_i32_0 : i32, i32
  }
  func.func @transform_7(%arg0: i32) -> (i32, i32) {
    %c0_i32 = arith.constant 0 : i32
    %c0_i32_0 = arith.constant 0 : i32
    return %arg0, %c0_i32 : i32, i32
  }
}

</mosaic_0001>

<bundles_post_ra>
// kernel: tpu_custom_call.1
= control target key start
LH: loop header
LB: loop body
LE: loop exit
PB: predicated region body
PF: predicated region fallthrough
CT: control target
= control target key end

     0   :  { %12 = vsyncpa [#allocation3], 0  ;;  %s1991_s0 = inlined_call_operand.hbm [shape: f32[64,256], index: 0, kind: input, shape index: {}]   ;;  %s1992_s1 = inlined_call_operand.hbm [shape: bf16[256,256], index: 1, kind: input, shape index: {}]   ;;  %s1993_s2 = inlined_call_operand.vmem [shape: f32[1,256], index: 2, kind: input, shape index: {}]   ;;  %s1994_s3 = inlined_call_operand.hbm [shape: bf16[256,256], index: 3, kind: input, shape index: {}]   ;;  %s1995_s4 = inlined_call_operand.vmem [shape: f32[1,256], index: 4, kind: input, shape index: {}]   ;;  %s1996_s5 = inlined_call_operand.hbm [shape: bf16[256,128], index: 5, kind: input, shape index: {}]   ;;  %s1997_s6 = inlined_call_operand.vmem [shape: f32[1,128], index: 6, kind: input, shape index: {}]   ;;  %s1998_s7 = inlined_call_operand.hbm [shape: f32[64,128], index: 7, kind: output, shape index: {}]  }
   0x1   :  { %14 = vsyncpa [#allocation3 + $0x1], 0 }
   0x2   :  { %15 = vsyncpa [#allocation6], 0 }
   0x3   :  { %16 = vsyncpa [#allocation9], 0 }
   0x4   :  { %17 = vsyncpa [#allocation4], 0 }
   0x5   :  { %19 = vsyncpa [#allocation4 + $0x1], 0  ;;  %s1718_s24 = smov 0   ;;  %s1720_s25 = smov 0  }
   0x6   :  { %s1722_s26 = smov 0   ;;  %s1724_s27 = smov 0  }
   0x7 LB: > { %s1739_s28 = sadd.s32 4294967295, %s1663_s27   ;;  %s1151_s29 = sadd.s32 4294967294, %s1663_s27   ;;  %s1663_s27 = sphi %s1724_s27, %s2023_s27   ;;  %s1659_s26 = sphi %s1722_s26, %s2022_s26   ;;  %s1655_s25 = sphi %s1720_s25, %s2021_s25   ;;  %s1651_s24 = sphi %s1718_s24, %s2020_s24  }
   0x8   : > { %p45_p0 = scmp.ne.s32.totalorder %s1655_s25, %s1651_s24  ;;  %p1999_p1 = scmp.eq.s32.totalorder %s1739_s28, 0 }
   0x9   : > { %p201_p3 = scmp.eq.s32.totalorder %s1151_s29, 3  ;;  %p1152_p5 = scmp.ge.s32.totalorder %s1663_s27, 1 }
   0xa   : > { %p1748_p4 = por %p1999_p1, %p45_p0  ;;  %p208_p7 = scmp.lt.s32.totalorder %s1663_s27, 5 }
   0xb   : > { %p1753_p6 = por %p201_p3, %p45_p0  ;;  %s1665_s10 = smov [#allocation5]  }
   0xc   : > { %s2003_s30 = scalar_select %p1748_p4, 1, 0 }
   0xd   : > { %s2004_s8 = scalar_select %p1753_p6, 1, 0 }
   0xe   : > { %p1758_p8 = pnand %p1152_p5, %p208_p7  ;;  %s220_s11 = sshll.u32 %s1665_s10, 4  ;;  %s1762_s11 = int_to_ptr.vmem [resolvable:$true] %s220_s11 }
   0xf   : > { %2005 = sst [smem:[#allocation15_spill]] %s2004_s8  ;;  %s1666_s13 = smov [#allocation7]  }
  0x10   : > { %s2006_s9 = scalar_select %p1758_p8, 1, 0 }
  0x11   : > { %p1294_p9 = pneg %p1758_p8  ;;  %s236_s14 = sshll.u32 %s1666_s13, 4  ;;  %s1772_s14 = int_to_ptr.vmem [resolvable:$true] %s236_s14 }
  0x12   : > { %s1667_s15 = smov [#allocation8]   ;;  %s1475_s19 = scalar_lea.hbm %s1992_s1, 4096 }
  0x13   : > { %p1768_p10 = pnand %p1294_p9, %p1999_p1  ;;  %s1774_s16 = sshll.u32 %s1667_s15, 4  ;;  %s253_s16 = int_to_ptr.vmem [resolvable:$true] %s1774_s16 }
  0x14   : > { %p1476_p11 = scmp.ne.s32.totalorder %s1992_s1, %s1475_s19  ;;  %p1482_p3 = scmp.lt.u32.totalorder %s1475_s19, %s1992_s1 }
  0x15   : > { %p1784_p12 = pneg %p1768_p10 }
  0x17   : > { %p1478_p13 = pnand %p1784_p12, %p1476_p11 }
  0x19   : > { %p1479_p0 = pneg %p1478_p13 }
  0x1b   : > { %p1484_p5 = pnand %p1482_p3, %p1479_p0 }
  0x1d   : > { %1487 = shalt.err (!%p1484_p5)
}
  0x1e   : > { %s1488_s10 = scalar_lea.vmem %s1762_s11, 4096  ;;  %p1496_p2 = scmp.lt.s32.totalorder %s1762_s11, %s1762_s11 }
  0x1f   : > { %p1489_p7 = scmp.ne.s32.totalorder %s1762_s11, %s1488_s10  ;;  %p1497_p6 = scmp.lt.s32.totalorder %s1488_s10, %s1488_s10 }
  0x21   : > { %p1491_p9 = pnand %p1489_p7, %p1784_p12  ;;  %p1498_p11 = por %p1497_p6, %p1496_p2 }
  0x23   : > { %p1492_p1 = pneg %p1491_p9 }
  0x25   : > { %p1499_p13 = pnand %p1498_p11, %p1492_p1 }
  0x27   : > { %1502 = shalt.err (!%p1499_p13)
}
  0x28   : > { %s1668_s13 = smov 128   ;;  %s1669_s15 = smov 8  }
  0x29   : > { %1297 = dma.hbm_to_vmem [thread:$0]  (!%p1768_p10), %s1992_s1, 4096, %s1762_s11, [#allocation6], %s1668_s13, %s1668_s13, %s1669_s15  }
  0x2a   : > { %s1503_s21 = scalar_lea.hbm %s1994_s3, 4096 }
  0x2b   : > { %p1504_p2 = scmp.ne.s32.totalorder %s1994_s3, %s1503_s21  ;;  %p1510_p0 = scmp.lt.u32.totalorder %s1503_s21, %s1994_s3 }
  0x2d   : > { %p1506_p1 = pnand %p1504_p2, %p1784_p12 }
  0x2f   : > { %p1507_p6 = pneg %p1506_p1 }
  0x31   : > { %p1512_p3 = pnand %p1510_p0, %p1507_p6 }
  0x33   : > { %1515 = shalt.err (!%p1512_p3)
}
  0x34   : > { %s1516_s11 = scalar_lea.vmem %s1772_s14, 4096  ;;  %p1524_p11 = scmp.lt.s32.totalorder %s1772_s14, %s1772_s14 }
  0x35   : > { %p1517_p5 = scmp.ne.s32.totalorder %s1772_s14, %s1516_s11  ;;  %p1525_p13 = scmp.lt.s32.totalorder %s1516_s11, %s1516_s11 }
  0x37   : > { %p1519_p7 = pnand %p1517_p5, %p1784_p12  ;;  %p1526_p2 = por %p1525_p13, %p1524_p11 }
  0x39   : > { %p1520_p9 = pneg %p1519_p7 }
  0x3b   : > { %p1527_p1 = pnand %p1526_p2, %p1520_p9 }
  0x3d   : > { %1530 = shalt.err (!%p1527_p1)
}
  0x3e   : > { %1300 = dma.hbm_to_vmem [thread:$0]  (!%p1768_p10), %s1994_s3, 4096, %s1772_s14, [#allocation6], %s1668_s13, %s1668_s13, %s1669_s15  }
  0x3f   : > { %s1531_s20 = scalar_lea.hbm %s1996_s5, 2048 }
  0x40   : > { %p1532_p6 = scmp.ne.s32.totalorder %s1996_s5, %s1531_s20  ;;  %p1538_p5 = scmp.lt.u32.totalorder %s1531_s20, %s1996_s5 }
  0x42   : > { %p1534_p0 = pnand %p1532_p6, %p1784_p12 }
  0x44   : > { %p1535_p3 = pneg %p1534_p0 }
  0x46   : > { %p1540_p7 = pnand %p1538_p5, %p1535_p3 }
  0x48   : > { %1543 = shalt.err (!%p1540_p7)
}
  0x49   : > { %s1544_s11 = scalar_lea.vmem %s253_s16, 2048  ;;  %p1552_p2 = scmp.lt.s32.totalorder %s253_s16, %s253_s16 }
  0x4a   : > { %p1545_p9 = scmp.ne.s32.totalorder %s253_s16, %s1544_s11  ;;  %p1553_p1 = scmp.lt.s32.totalorder %s1544_s11, %s1544_s11 }
  0x4c   : > { %p1547_p11 = pnand %p1545_p9, %p1784_p12  ;;  %p1554_p4 = por %p1553_p1, %p1552_p2 }
  0x4e   : > { %p1548_p13 = pneg %p1547_p11 }
  0x50   : > { %p1555_p8 = pnand %p1554_p4, %p1548_p13 }
  0x52   : > { %1558 = shalt.err (!%p1555_p8)
}
  0x53   : > { %s1670_s14 = smov 64   ;;  %s1671_s22 = smov 4  }
  0x54   : > { %1303 = dma.hbm_to_vmem [thread:$0]  (!%p1768_p10), %s1996_s5, 2048, %s253_s16, [#allocation9], %s1670_s14, %s1670_s14, %s1671_s22  }
  0x55   : > { %s1848_s8 = sadd.s32 1, %s1663_s27   ;;  %s32_s18 = sadd.s32 1, %s1659_s26 }
  0x56   : > { %s29_s17 = ssub.s32 %s1663_s27, %s1848_s8  ;;  %p39_p8 = scmp.ne.s32.totalorder %s1659_s26, %s1655_s25 }
  0x57   : > { %p30_p4 = scmp.eq.s32.totalorder %s29_s17, 0  ;;  %p40_p12 = scmp.eq.s32.totalorder %s1663_s27, 0 }
  0x58   : > { %p1315_p6 = scmp.lt.s32.totalorder %s1663_s27, 4  ;;  %p2009_p3 = scmp.eq.s32.totalorder %s1739_s28, 3 }
  0x59   : > { %s1858_s19 = scalar_select %p30_p4, %s1659_s26, %s32_s18  }
  0x5a   : > { %p41_p0 = por %p40_p12, %p39_p8  ;;  %p1862_p5 = por %p2009_p3, %p39_p8 }
  0x5b   : > { %s269_s12 = sand.u32 1, %s1659_s26   ;;  %s1254_s21 = sshll.u32 %s1663_s27, 9 }
  0x5c   : > { %s1157_s16 = sshll.u32 %s269_s12, 5  ;;  %s1871_s10 = scalar_lea.hbm %s1991_s0, %s1254_s21 }
  0x5d   : > { %s273_s11 = scalar_lea.vmem [#allocation2], %s1157_s16  ;;  %p1873_p10 = pnand %p1315_p6, %p41_p0 }
  0x5e   : > { %s281_s14 = sshll.u32 %s273_s11, 4  ;;  %s1879_s13 = scalar_lea.sflag [#allocation3], %s269_s12  ;;  %s1877_s14 = int_to_ptr.vmem [resolvable:$true] %s281_s14 }
  0x5f   : > { %s1559_s15 = scalar_lea.hbm %s1871_s10, 512  ;;  %p1561_p9 = pneg %p1873_p10 }
  0x60   : > { %p1560_p7 = scmp.ne.s32.totalorder %s1871_s10, %s1559_s15  ;;  %s1564_s21 = scalar_lea.hbm %s1991_s0, 2048 }
  0x61   : > { %p1565_p2 = scmp.lt.u32.totalorder %s1871_s10, %s1991_s0  ;;  %p1566_p1 = scmp.lt.u32.totalorder %s1564_s21, %s1559_s15 }
  0x62   : > { %p1562_p11 = pnand %p1561_p9, %p1560_p7  ;;  %p1568_p8 = scmp.lt.u32.totalorder %s1559_s15, %s1871_s10 }
  0x63   : > { %p1567_p4 = por %p1566_p1, %p1565_p2 }
  0x64   : > { %p1563_p13 = pneg %p1562_p11 }
  0x65   : > { %p1569_p12 = por %p1568_p8, %p1567_p4 }
  0x67   : > { %p1570_p6 = pnand %p1569_p12, %p1563_p13 }
  0x69   : > { %1573 = shalt.err (!%p1570_p6)
}
  0x6a   : > { %s1574_s12 = scalar_lea.vmem %s1877_s14, 512  ;;  %s1672_s29 = smov [#allocation2]  }
  0x6b   : > { %p1575_p0 = scmp.ne.s32.totalorder %s1877_s14, %s1574_s12  ;;  %s1579_s11 = sshll.u32 %s1672_s29, 4  ;;  %s1580_s11 = int_to_ptr.vmem [resolvable:$false] %s1579_s11 }
  0x6c   : > { %s1581_s17 = scalar_lea.vmem %s1580_s11, 1024  ;;  %p1582_p11 = scmp.lt.s32.totalorder %s1877_s14, %s1580_s11 }
  0x6d   : > { %p1577_p3 = pnand %p1575_p0, %p1561_p9  ;;  %p1583_p2 = scmp.lt.s32.totalorder %s1581_s17, %s1574_s12 }
  0x6f   : > { %p1578_p7 = pneg %p1577_p3  ;;  %p1584_p1 = por %p1583_p2, %p1582_p11 }
  0x71   : > { %p1585_p4 = pnand %p1584_p1, %p1578_p7 }
  0x73   : > { %1588 = shalt.err (!%p1585_p4)
}
  0x74   : > { %s1673_s15 = smov 256   ;;  %s1674_s18 = smov 16  }
  0x75   : > { %1307 = dma.hbm_to_vmem [thread:$0]  (!%p1873_p10), %s1871_s10, 512, %s1877_s14, %s1879_s13, %s1673_s15, %s1673_s15, %s1674_s18  }
  0x76   : > { %p2012_p9 = scmp.ne.s32.totalorder %s2006_s9, 0 }
  0x77   : > { %s1910_s21 = sand.u32 (!%p2012_p9), 1, %s1655_s25   ;;  %p2013_p13 = scmp.ne.s32.totalorder (!%p2012_p9), %s2003_s30, 0 }
  0x78   : > { %293 = sbr.rel (%p2012_p9) target bundleno = 878 (0x36e), region = 48  ;;  %s1162_s16 = sshll.u32 (!%p2012_p9), %s1910_s21, 5 }
  0x79   : > { %s296_s23 = scalar_lea.sflag (!%p2012_p9), [#allocation3], %s1910_s21  ;;  %s1914_s12 = scalar_lea.vmem (!%p2012_p9), [#allocation2], %s1162_s16 }
  0x7f   : > { %1634 = dma.done.wait (%p2013_p13), %s296_s23, 512  }
  0x80   : > { %1636 = vsyncadd (%p2013_p13), %s296_s23, 4294966784  ;;  %p2014_p10 = scmp.eq.s32.totalorder %s1739_s28, 0 }
  0x82   : > { %1638 = dma.done.wait (%p2014_p10), [#allocation6], 8192   ;;  %p2015_p8 = pmov %p2014_p10 }
  0x84   : > { %1640 = vsyncadd (%p2015_p8), [#allocation6], 4294959104  ;;  %p2016_p12 = pmov %p2015_p8 }
  0x85   : > { %p2017_p6 = pmov %p2015_p8 }
  0x86   : > { %1642 = dma.done.wait (%p2016_p12), [#allocation9], 2048  }
  0x87   : > { %1644 = vsyncadd (%p2017_p6), [#allocation9], 4294965248  ;;  %v1363_v0 = vld [vmem:[#allocation5 + $0x4] ss:$8 sps:$4 sm:$0xff]   ;;  %v1365_v1 = vld [vmem:[#allocation5] ss:$8 sps:$4 sm:$0xff]  }
  0x88   : > { %555 = vmatprep.subr.bf16.mxu0 %v1363_v0  ;;  %v1366_v2 = vld [vmem:[#allocation5 + $0x14] ss:$8 sps:$4 sm:$0xff]   ;;  %v1368_v3 = vld [vmem:[#allocation5 + $0x10] ss:$8 sps:$4 sm:$0xff]   ;;  %v1369_v4 = vld [vmem:[#allocation5 + $0x24] ss:$8 sps:$4 sm:$0xff]  }
  0x89   : > { %556 = vmatpush1.bf16.msra.mxu0 %v1365_v1  ;;  %v1371_v5 = vld [vmem:[#allocation5 + $0x20] ss:$8 sps:$4 sm:$0xff]   ;;  %v1372_v6 = vld [vmem:[#allocation5 + $0x34] ss:$8 sps:$4 sm:$0xff]   ;;  %v1374_v7 = vld [vmem:[#allocation5 + $0x30] ss:$8 sps:$4 sm:$0xff]  }
  0x8a   : > { %557 = vmatprep.subr.bf16.mxu0 %v1366_v2  ;;  %v1375_v8 = vld [vmem:[#allocation5 + $0x44] ss:$8 sps:$4 sm:$0xff]   ;;  %v1377_v9 = vld [vmem:[#allocation5 + $0x40] ss:$8 sps:$4 sm:$0xff]   ;;  %v1378_v10 = vld [vmem:[#allocation5 + $0x54] ss:$8 sps:$4 sm:$0xff]  }
  0x8b   : > { %v1380_v11 = vld [vmem:[#allocation5 + $0x50] ss:$8 sps:$4 sm:$0xff]   ;;  %v1381_v12 = vld [vmem:[#allocation5 + $0x64] ss:$8 sps:$4 sm:$0xff]   ;;  %v1383_v15 = vld [vmem:[#allocation5 + $0x60] ss:$8 sps:$4 sm:$0xff]  }
  0x8c   : > { %v346_v13 = vld [vmem:[%s1914_s12 + $0x8] sm:$0xff]  ;;  %v348_v14 = vld [vmem:[%s1914_s12 + $0x18] sm:$0xff]  ;;  %v345_v55 = vld [vmem:[%s1914_s12] sm:$0xff]  ;;  %s1166_s22 = sshll.u32 %s1910_s21, 4  ;;  %s1255_s15 = sshll.u32 %s1739_s28, 8 }
  0x8d   : > { %558 = vmatpush1.bf16.msra.mxu0 %v1368_v3  ;;  %v1384_v16 = vld [vmem:[#allocation5 + $0x74] ss:$8 sps:$4 sm:$0xff]   ;;  %v350_v17 = vpack.c.bf16 %v348_v14, %v346_v13  ;;  %v1411_v18 = vld [vmem:[#allocation7 + $0x4] ss:$8 sps:$4 sm:$0xff]   ;;  %v1413_v19 = vld [vmem:[#allocation7] ss:$8 sps:$4 sm:$0xff]   ;;  %s1948_s23 = scalar_lea.hbm %s1998_s7, %s1255_s15 }
  0x8e   : > { %559 = vmatprep.subr.bf16.mxu0 %v1369_v4  ;;  %v1414_v20 = vld [vmem:[#allocation7 + $0x14] ss:$8 sps:$4 sm:$0xff]   ;;  %808 = vmatprep.subr.bf16.mxu1 %v1411_v18  ;;  %v1416_v21 = vld [vmem:[#allocation7 + $0x10] ss:$8 sps:$4 sm:$0xff]   ;;  %v1417_v23 = vld [vmem:[#allocation7 + $0x24] ss:$8 sps:$4 sm:$0xff]  }
  0x8f   : > { %587 = vmatprep.mubr.bf16.mxu0 %v350_v17  ;;  %809 = vmatpush1.bf16.msra.mxu1 %v1413_v19  ;;  %v1386_v22 = vld [vmem:[#allocation5 + $0x70] ss:$8 sps:$4 sm:$0xff]   ;;  %v1387_v24 = vld [vmem:[#allocation5 + $0x84] ss:$8 sps:$4 sm:$0xff]   ;;  %v1419_v25 = vld [vmem:[#allocation7 + $0x20] ss:$8 sps:$4 sm:$0xff]   ;;  %v385_v17 = vlaneseq }
  0x90   : > { %810 = vmatprep.subr.bf16.mxu1 %v1414_v20  ;;  %v1389_v26 = vld [vmem:[#allocation5 + $0x80] ss:$8 sps:$4 sm:$0xff]   ;;  %v1420_v27 = vld [vmem:[#allocation7 + $0x34] ss:$8 sps:$4 sm:$0xff]   ;;  %v1422_v29 = vld [vmem:[#allocation7 + $0x30] ss:$8 sps:$4 sm:$0xff]  }
  0x91   : > { %560 = vmatpush1.bf16.msra.mxu0 %v1371_v5  ;;  %v1390_v28 = vld [vmem:[#allocation5 + $0x94] ss:$8 sps:$4 sm:$0xff]   ;;  %v1392_v30 = vld [vmem:[#allocation5 + $0x90] ss:$8 sps:$4 sm:$0xff]   ;;  %v1423_v31 = vld [vmem:[#allocation7 + $0x44] ss:$8 sps:$4 sm:$0xff]  }
  0x92   : > { %561 = vmatprep.subr.bf16.mxu0 %v1372_v6  ;;  %v1393_v32 = vld [vmem:[#allocation5 + $0xa4] ss:$8 sps:$4 sm:$0xff]   ;;  %v1395_v33 = vld [vmem:[#allocation5 + $0xa0] ss:$8 sps:$4 sm:$0xff]   ;;  %v1396_v35 = vld [vmem:[#allocation5 + $0xb4] ss:$8 sps:$4 sm:$0xff]  }
  0x93   : > { %811 = vmatpush1.bf16.msra.mxu1 %v1416_v21  ;;  %v1425_v34 = vld [vmem:[#allocation7 + $0x40] ss:$8 sps:$4 sm:$0xff]   ;;  %v1426_v36 = vld [vmem:[#allocation7 + $0x54] ss:$8 sps:$4 sm:$0xff]   ;;  %v1428_v37 = vld [vmem:[#allocation7 + $0x50] ss:$8 sps:$4 sm:$0xff]  }
  0x94   : > { %812 = vmatprep.subr.bf16.mxu1 %v1417_v23  ;;  %v1398_v38 = vld [vmem:[#allocation5 + $0xb0] ss:$8 sps:$4 sm:$0xff]   ;;  %v1429_v39 = vld [vmem:[#allocation7 + $0x64] ss:$8 sps:$4 sm:$0xff]   ;;  %v1431_v41 = vld [vmem:[#allocation7 + $0x60] ss:$8 sps:$4 sm:$0xff]  }
  0x95   : > { %562 = vmatpush1.bf16.msra.mxu0 %v1374_v7  ;;  %v1399_v40 = vld [vmem:[#allocation5 + $0xc4] ss:$8 sps:$4 sm:$0xff]   ;;  %v1401_v42 = vld [vmem:[#allocation5 + $0xc0] ss:$8 sps:$4 sm:$0xff]   ;;  %v1432_v43 = vld [vmem:[#allocation7 + $0x74] ss:$8 sps:$4 sm:$0xff]  }
  0x96   : > { %563 = vmatprep.subr.bf16.mxu0 %v1375_v8  ;;  %v1402_v44 = vld [vmem:[#allocation5 + $0xd4] ss:$8 sps:$4 sm:$0xff]   ;;  %v1434_v45 = vld [vmem:[#allocation7 + $0x70] ss:$8 sps:$4 sm:$0xff]   ;;  %v1435_v47 = vld [vmem:[#allocation7 + $0x84] ss:$8 sps:$4 sm:$0xff]  }
  0x97   : > { %813 = vmatpush1.bf16.msra.mxu1 %v1419_v25  ;;  %v1404_v46 = vld [vmem:[#allocation5 + $0xd0] ss:$8 sps:$4 sm:$0xff]   ;;  %v1405_v48 = vld [vmem:[#allocation5 + $0xe4] ss:$8 sps:$4 sm:$0xff]   ;;  %v1437_v49 = vld [vmem:[#allocation7 + $0x80] ss:$8 sps:$4 sm:$0xff]  }
  0x98   : > { %814 = vmatprep.subr.bf16.mxu1 %v1420_v27  ;;  %v1407_v50 = vld [vmem:[#allocation5 + $0xe0] ss:$8 sps:$4 sm:$0xff]   ;;  %v1438_v51 = vld [vmem:[#allocation7 + $0x94] ss:$8 sps:$4 sm:$0xff]   ;;  %v1410_v53 = vld [vmem:[#allocation5 + $0xf0] ss:$8 sps:$4 sm:$0xff]  }
  0x99   : > { %564 = vmatpush1.bf16.msra.mxu0 %v1377_v9  ;;  %v1408_v52 = vld [vmem:[#allocation5 + $0xf4] ss:$8 sps:$4 sm:$0xff]   ;;  %v1440_v54 = vld [vmem:[#allocation7 + $0x90] ss:$8 sps:$4 sm:$0xff]   ;;  %v1441_v57 = vld [vmem:[#allocation7 + $0xa4] ss:$8 sps:$4 sm:$0xff]  }
  0x9a   : > { %565 = vmatprep.subr.bf16.mxu0 %v1378_v10  ;;  %v347_v56 = vld [vmem:[%s1914_s12 + $0x10] sm:$0xff]  ;;  %v1443_v59 = vld [vmem:[#allocation7 + $0xa0] ss:$8 sps:$4 sm:$0xff]   ;;  %v1447_v62 = vld [vmem:[#allocation7 + $0xc4] ss:$8 sps:$4 sm:$0xff]   ;;  %v386_v18 = vshrl.u32 %v385_v17, 7 }
  0x9b   : > { %815 = vmatpush1.bf16.msra.mxu1 %v1422_v29  ;;  %v349_v58 = vpack.c.bf16 %v347_v56, %v345_v55  ;;  %v1444_v60 = vld [vmem:[#allocation7 + $0xb4] ss:$8 sps:$4 sm:$0xff]   ;;  %v1446_v61 = vld [vmem:[#allocation7 + $0xb0] ss:$8 sps:$4 sm:$0xff]   ;;  %v1449_v63 = vld [vmem:[#allocation7 + $0xc0] ss:$8 sps:$4 sm:$0xff]  }
  0x9c   : > { %816 = vmatprep.subr.bf16.mxu1 %v1423_v31  ;;  %v1450_v0 = vld [vmem:[#allocation7 + $0xd4] ss:$8 sps:$4 sm:$0xff]   ;;  %v1452_v1 = vld [vmem:[#allocation7 + $0xd0] ss:$8 sps:$4 sm:$0xff]   ;;  %v1453_v2 = vld [vmem:[#allocation7 + $0xe4] ss:$8 sps:$4 sm:$0xff]  }
  0x9d   : > { %566 = vmatpush1.bf16.msra.mxu0 %v1380_v11  ;;  %v1455_v3 = vld [vmem:[#allocation7 + $0xe0] ss:$8 sps:$4 sm:$0xff]   ;;  %v1456_v4 = vld [vmem:[#allocation7 + $0xf4] ss:$8 sps:$4 sm:$0xff]   ;;  %v1458_v5 = vld [vmem:[#allocation7 + $0xf0] ss:$8 sps:$4 sm:$0xff]  }
  0x9e   : > { %567 = vmatprep.subr.bf16.mxu0 %v1381_v12  ;;  %v1459_v6 = vld [vmem:[#allocation8 + $0x40] sm:$0xff]   ;;  %v1461_v8 = vld [vmem:[#allocation8 + $0x48] sm:$0xff]   ;;  %v1463_v10 = vld [vmem:[#allocation8 + $0x50] sm:$0xff]   ;;  %v387_v19 = vsub.s32 0, %v386_v18  ;;  %v391_v21 = vsub.s32 1, %v386_v18  ;;  %s341_s11 = scalar_lea.vmem [#allocation10], %s1166_s22 }
  0x9f   : > { %817 = vmatpush1.bf16.msra.mxu1 %v1425_v34  ;;  %v1460_v7 = vld [vmem:[#allocation8] sm:$0xff]   ;;  %v1462_v9 = vld [vmem:[#allocation8 + $0x8] sm:$0xff]   ;;  %v1464_v11 = vld [vmem:[#allocation8 + $0x10] sm:$0xff]   ;;  %s1049_s17 = sshll.u32 %s341_s11, 4  ;;  %s1036_s12 = scalar_lea.sflag [#allocation4], %s1910_s21  ;;  %s1943_s17 = int_to_ptr.vmem [resolvable:$true] %s1049_s17 }
  0xa0   : > { %818 = vmatprep.subr.bf16.mxu1 %v1426_v36  ;;  %v1465_v12 = vld [vmem:[#allocation8 + $0x58] sm:$0xff]   ;;  %v1467_v14 = vld [vmem:[#allocation8 + $0x60] sm:$0xff]   ;;  %s1589_s30 = scalar_lea.vmem %s1943_s17, 256  ;;  %s1675_s28 = smov [#allocation10]  }
  0xa1   : > { %568 = vmatpush1.bf16.msra.mxu0 %v1383_v15  ;;  %v1466_v13 = vld [vmem:[#allocation8 + $0x18] sm:$0xff]   ;;  %v1468_v15 = vld [vmem:[#allocation8 + $0x20] sm:$0xff]   ;;  %p1590_p0 = scmp.ne.s32.totalorder %s1943_s17, %s1589_s30  ;;  %s1593_s9 = sshll.u32 %s1675_s28, 4  ;;  %s1594_s9 = int_to_ptr.vmem [resolvable:$false] %s1593_s9 }
  0xa2   : > { %569 = vmatprep.subr.bf16.mxu0 %v1384_v16  ;;  %v1469_v16 = vld [vmem:[#allocation8 + $0x68] sm:$0xff]   ;;  %v383_v20 = vld [vmem:[%s1993_s2] sm:$0x3]  ;;  %s1595_s10 = scalar_lea.vmem %s1594_s9, 512  ;;  %p1596_p11 = scmp.lt.s32.totalorder %s1943_s17, %s1594_s9 }
  0xa3   : > { %819 = vmatpush1.bf16.msra.mxu1 %v1428_v37  ;;  %v392_v23 = vrot.slane %v383_v20, %v391_v21  ;;  %p1591_p3 = pnand %p1590_p0, %p1862_p5  ;;  %p1597_p2 = scmp.lt.s32.totalorder %s1595_s10, %s1589_s30 }
  0xa4   : > { %820 = vmatprep.subr.bf16.mxu1 %v1429_v39  ;;  %v1471_v39 = vld [vmem:[#allocation8 + $0x70] sm:$0xff]  }
  0xa5   : > { %570 = vmatpush1.bf16.msra.mxu0 %v1386_v22  ;;  %v388_v22 = vrot.slane %v383_v20, %v387_v19  ;;  %p1592_p7 = pneg %p1591_p3  ;;  %p1598_p1 = por %p1597_p2, %p1596_p11 }
  0xa6   : > { %571 = vmatprep.subr.bf16.mxu0 %v1387_v24 }
  0xa7   : > { %821 = vmatpush1.bf16.msra.mxu1 %v1431_v41  ;;  %v1473_v41 = vld [vmem:[#allocation8 + $0x78] sm:$0xff]   ;;  %p1599_p4 = pnand %p1598_p1, %p1592_p7 }
  0xa8   : > { %822 = vmatprep.subr.bf16.mxu1 %v1432_v43  ;;  %v636_v43 = vld [vmem:[%s1995_s4] sm:$0x3] }
  0xa9   : > { %572 = vmatpush1.bf16.msra.mxu0 %v1389_v26 }
  0xaa   : > { %573 = vmatprep.subr.bf16.mxu0 %v1390_v28 }
  0xab   : > { %823 = vmatpush1.bf16.msra.mxu1 %v1434_v45  ;;  %v645_v45 = vrot.slane %v636_v43, %v391_v21 }
  0xac   : > { %824 = vmatprep.subr.bf16.mxu1 %v1435_v47 }
  0xad   : > { %574 = vmatpush1.bf16.msra.mxu0 %v1392_v30 }
  0xae   : > { %575 = vmatprep.subr.bf16.mxu0 %v1393_v32 }
  0xaf   : > { %825 = vmatpush1.bf16.msra.mxu1 %v1437_v49 }
  0xb0   : > { %826 = vmatprep.subr.bf16.mxu1 %v1438_v51 }
  0xb1   : > { %576 = vmatpush1.bf16.msra.mxu0 %v1395_v33 }
  0xb2   : > { %577 = vmatprep.subr.bf16.mxu0 %v1396_v35 }
  0xb3   : > { %827 = vmatpush1.bf16.msra.mxu1 %v1440_v54 }
  0xb4   : > { %828 = vmatprep.subr.bf16.mxu1 %v1441_v57 }
  0xb5   : > { %578 = vmatpush1.bf16.msra.mxu0 %v1398_v38  ;;  %v1470_v38 = vld [vmem:[#allocation8 + $0x28] sm:$0xff]  }
  0xb6   : > { %579 = vmatprep.subr.bf16.mxu0 %v1399_v40  ;;  %v1472_v40 = vld [vmem:[#allocation8 + $0x30] sm:$0xff]  }
  0xb7   : > { %829 = vmatpush1.bf16.msra.mxu1 %v1443_v59 }
  0xb8   : > { %830 = vmatprep.subr.bf16.mxu1 %v1444_v60 }
  0xb9   : > { %580 = vmatpush1.bf16.msra.mxu0 %v1401_v42  ;;  %v1474_v42 = vld [vmem:[#allocation8 + $0x38] sm:$0xff]  }
  0xba   : > { %581 = vmatprep.subr.bf16.mxu0 %v1402_v44  ;;  %v641_v44 = vrot.slane %v636_v43, %v387_v19 }
  0xbb   : > { %831 = vmatpush1.bf16.msra.mxu1 %v1446_v61  ;;  %v1231_v61 = vld [vmem:[%s1997_s6] ss:$0 sm:$0xff] }
  0xbc   : > { %832 = vmatprep.subr.bf16.mxu1 %v1447_v62 }
  0xbd   : > { %582 = vmatpush1.bf16.msra.mxu0 %v1404_v46 }
  0xbe   : > { %583 = vmatprep.subr.bf16.mxu0 %v1405_v48 }
  0xbf   : > { %833 = vmatpush1.bf16.msra.mxu1 %v1449_v63 }
  0xc0   : > { %834 = vmatprep.subr.bf16.mxu1 %v1450_v0 }
  0xc1   : > { %584 = vmatpush1.bf16.msra.mxu0 %v1407_v50 }
  0xc2   : > { %585 = vmatprep.subr.bf16.mxu0 %v1408_v52 }
  0xc3   : > { %835 = vmatpush1.bf16.msra.mxu1 %v1452_v1 }
  0xc4   : > { %836 = vmatprep.subr.bf16.mxu1 %v1453_v2 }
  0xc5   : > { %586 = vmatpush1.bf16.msra.mxu0 %v1410_v53 }
  0xc6   : > { %1256 = vmatprep.subr.bf16.mxu0 %v1459_v6 }
  0xc7   : > { %837 = vmatpush1.bf16.msra.mxu1 %v1455_v3 }
  0xc8   : > { %588 = vmatmul.mubr.bf16.vlgmr.msra.gmra.mrb[0].mxu0 %v349_v58  ;;  %838 = vmatprep.subr.bf16.mxu1 %v1456_v4 }
  0xc9   : > { %1257 = vmatpush3.bf16.msra.mxu0 %v1460_v7 }
  0xca   : > { %1258 = vmatprep.subr.bf16.mxu0 %v1461_v8 }
  0xcb   : > { %839 = vmatpush1.bf16.msra.mxu1 %v1458_v5 }
  0xcd   : > { %1259 = vmatpush3.bf16.msra.mxu0 %v1462_v9 }
  0xce   : > { %1260 = vmatprep.subr.bf16.mxu0 %v1463_v10 }
  0xd1   : > { %1261 = vmatpush3.bf16.msra.mxu0 %v1464_v11 }
  0xd2   : > { %1262 = vmatprep.subr.bf16.mxu0 %v1465_v12 }
  0xd5   : > { %1263 = vmatpush3.bf16.msra.mxu0 %v1466_v13 }
  0xd6   : > { %1264 = vmatprep.subr.bf16.mxu0 %v1467_v14 }
  0xd9   : > { %1265 = vmatpush3.bf16.msra.mxu0 %v1468_v15 }
  0xda   : > { %1266 = vmatprep.subr.bf16.mxu0 %v1469_v16 }
  0xdd   : > { %1267 = vmatpush3.bf16.msra.mxu0 %v1470_v38 }
  0xde   : > { %1268 = vmatprep.subr.bf16.mxu0 %v1471_v39 }
  0xe1   : > { %1269 = vmatpush3.bf16.msra.mxu0 %v1472_v40 }
  0xe2   : > { %1270 = vmatprep.subr.bf16.mxu0 %v1473_v41 }
  0xe5   : > { %1271 = vmatpush3.bf16.msra.mxu0 %v1474_v42 }
 0x19b   : > { %v589_v24 = vpop.f32.mrb[0].mxu0 }
 0x19c   : > { %v590_v25 = vadd.f32 %v589_v24, %v388_v22  ;;  %v591_v26 = vpop.f32.mrb[1].mxu0 }
 0x19d   : > { %v592_v27 = vadd.f32 %v591_v26, %v392_v23  ;;  %v593_v28 = vpop.f32.mrb[2].mxu0 }
 0x19e   : > { %v594_v29 = vadd.f32 %v593_v28, %v388_v22  ;;  %v595_v30 = vpop.f32.mrb[3].mxu0  ;;  %v598_v32 = vmax.f32 %v590_v25, 0.0 }
 0x19f   : > { %v596_v31 = vadd.f32 %v595_v30, %v392_v23  ;;  %v599_v34 = vmax.f32 %v592_v27, 0.0 }
 0x1a0   : > { %v600_v33 = vmax.f32 %v594_v29, 0.0 }
 0x1a1   : > { %v601_v35 = vmax.f32 %v596_v31, 0.0 }
 0x1a2   : > { %v602_v36 = vpack.c.bf16 %v600_v33, %v598_v32 }
 0x1a3   : > { %v603_v37 = vpack.c.bf16 %v601_v35, %v599_v34 }
 0x1a5   : > { %840 = vmatprep.mubr.bf16.mxu1 %v603_v37 }
 0x1a6   : > { %841 = vmatmul.mubr.bf16.vlgmr.msra.gmra.mrb[0].mxu1 %v602_v36 }
 0x279   : > { %v842_v46 = vpop.f32.mrb[0].mxu1 }
 0x27a   : > { %v843_v47 = vadd.f32 %v842_v46, %v641_v44  ;;  %v844_v48 = vpop.f32.mrb[1].mxu1 }
 0x27b   : > { %v845_v49 = vadd.f32 %v844_v48, %v645_v45  ;;  %v846_v50 = vpop.f32.mrb[2].mxu1 }
 0x27c   : > { %v847_v51 = vadd.f32 %v846_v50, %v641_v44  ;;  %v848_v52 = vpop.f32.mrb[3].mxu1  ;;  %v851_v54 = vmax.f32 %v843_v47, 0.0 }
 0x27d   : > { %v849_v53 = vadd.f32 %v848_v52, %v645_v45  ;;  %v852_v56 = vmax.f32 %v845_v49, 0.0 }
 0x27e   : > { %v853_v55 = vmax.f32 %v847_v51, 0.0 }
 0x27f   : > { %v854_v57 = vmax.f32 %v849_v53, 0.0 }
 0x280   : > { %v855_v58 = vpack.c.bf16 %v853_v55, %v851_v54 }
 0x281   : > { %v856_v59 = vpack.c.bf16 %v854_v57, %v852_v56 }
 0x283   : > { %1024 = vmatprep.mubr.bf16.mxu0 %v856_v59 }
 0x284   : > { %1025 = vmatmul.mubr.bf16.vlgmr.msra.gmra.mrb[4].mxu0 %v855_v58 }
 0x357   : > { %v1272_v60 = vpop.f32.mrb[4].mxu0 }
 0x358   : > { %v1273_v62 = vpop.f32.mrb[5].mxu0 }
 0x359   : > { %v1274_v63 = vadd.f32 %v1273_v62, %v1272_v60  ;;  %v1275_v0 = vpop.f32.mrb[6].mxu0 }
 0x35a   : > { %v1276_v1 = vpop.f32.mrb[7].mxu0 }
 0x35b   : > { %v1027_v2 = vadd.f32 %v1274_v63, %v1231_v61  ;;  %v1277_v3 = vadd.f32 %v1276_v1, %v1275_v0 }
 0x35d   : > { %1033 = vst [vmem:[%s341_s11] sm:$0xff] %v1027_v2  ;;  %v1030_v4 = vadd.f32 %v1277_v3, %v1231_v61 }
 0x35f   : > { %1034 = vst [vmem:[%s341_s11 + $0x8] sm:$0xff] %v1030_v4 }
 0x360   : > { %1602 = shalt.err (!%p1599_p4)
}
 0x361   : > { %s1603_s14 = scalar_lea.hbm %s1948_s23, 256  ;;  %s1607_s29 = scalar_lea.hbm %s1998_s7, 1024 }
 0x362   : > { %p1604_p9 = scmp.ne.s32.totalorder %s1948_s23, %s1603_s14  ;;  %p1608_p8 = scmp.lt.u32.totalorder %s1948_s23, %s1998_s7 }
 0x363   : > { %p1609_p12 = scmp.lt.u32.totalorder %s1607_s29, %s1603_s14  ;;  %p1611_p0 = scmp.lt.u32.totalorder %s1603_s14, %s1948_s23 }
 0x364   : > { %p1605_p13 = pnand %p1604_p9, %p1862_p5 }
 0x365   : > { %p1610_p6 = por %p1609_p12, %p1608_p8 }
 0x366   : > { %p1606_p10 = pneg %p1605_p13 }
 0x367   : > { %p1612_p3 = por %p1611_p0, %p1610_p6 }
 0x369   : > { %p1613_p7 = pnand %p1612_p3, %p1606_p10 }
 0x36b   : > { %1616 = shalt.err (!%p1613_p7)
}
 0x36c   : > { %s1676_s18 = smov 128   ;;  %s1677_s16 = smov 8  }
 0x36d   : > { %1292 = dma.vmem_to_hbm [thread:$0]  (%p1862_p5), %s1943_s17, 256, %s1948_s23, %s1036_s12, %s1676_s18, %s1676_s18, %s1677_s16  }
 0x36e PF: > { %s2018_s30 = sld [smem:[#allocation15_spill]]  ;;  %p1319_p11 = scmp.ge.s32.totalorder %s1663_s27, 2 }
 0x36f   : > { %s1064_s28 = sand.u32 1, %s1651_s24  }
 0x370   : > { %s1065_s9 = scalar_lea.sflag [#allocation4], %s1064_s28 }
 0x374   : > { %p2019_p2 = scmp.ne.s32.totalorder %s2018_s30, 0 }
 0x376   : > { %p1309_p1 = pnand %p1319_p11, %p2019_p2 }
 0x378   : > { %1646 = dma.done.wait (!%p1309_p1), %s1065_s9, 256  }
 0x379   : > { %1648 = vsyncadd (!%p1309_p1), %s1065_s9, 4294967040  ;;  %p22_p4 = scmp.ge.s32.totalorder %s1848_s8, 6   ;;  %s2020_s24 = smov %s1655_s25 }
 0x37a   : > { %s2021_s25 = smov %s1659_s26  ;;  %s2022_s26 = smov %s1858_s19 }
 0x37b   : > { %s2023_s27 = smov %s1848_s8  ;;  %24 = sbr.rel (!%p22_p4) target bundleno = 7 (0x7), region = 105 }
 0x382   :  { %1070 = vsyncpa [#allocation3], 1 }
 0x383   :  { %1072 = vsyncpa [#allocation3 + $0x1], 1 }
 0x384   :  { %1073 = vsyncpa [#allocation6], 1 }
 0x385   :  { %1074 = vsyncpa [#allocation9], 1 }
 0x386   :  { %1075 = vsyncpa [#allocation4], 1 }
 0x387   :  { %1077 = vsyncpa [#allocation4 + $0x1], 1 }

</bundles_post_ra>
